<compile_context>
chip_gen: v7x
topology: tpu7x:2x2x1
jax: 0.10.0
libtpu: 0.0.40
codegen_flags: <defaults>
</compile_context>

<pallas_src>
import jax
import jax.numpy as jnp
from jax.experimental import pallas as pl
from jax.experimental.pallas import tpu as pltpu

IN_FEATURES = 28 * 28   # 784
HIDDEN = 128
OUT_FEATURES = 10
OUT_PADDED = 128        # lane-dense padded logits width
TB_MAX = 2048           # max batch tile (per-step VMEM ~15 MiB double-buffered)
TILE_ALIGN = 16         # bf16 sublane packing
NEG_BIG = -1e30         # bias for padded logit columns -> exp(...) == 0


def simple_nn_kernel(x_ref, w1_ref, b1_ref, w2_ref, b2_ref, o_ref):
    # x_ref : (TB, 784) f32     w1_ref: (784, 128) bf16   b1_ref: (1, 128) f32
    # w2_ref: (128, 128) bf16   b2_ref: (1, 128)  f32     o_ref : (TB, 128) bf16
    # Cast x on the VPU (hidden under the input DMA) so HBM only streams f32 x once.
    x = x_ref[...].astype(jnp.bfloat16)

    # fc1 + ReLU (MXU matmul, f32 accumulate)
    h = jnp.dot(x, w1_ref[...], preferred_element_type=jnp.float32)
    h = jnp.maximum(h + b1_ref[...], 0.0)

    # fc2 over the lane-dense, 128-wide padded logits (bf16 operands, f32 acc)
    logits = jnp.dot(h.astype(jnp.bfloat16), w2_ref[...],
                     preferred_element_type=jnp.float32)
    logits = logits + b2_ref[...]

    # numerically stable softmax; padded columns carry bias -1e30 -> exp == 0,
    # so the result matches softmax over the real 10 logits exactly.
    m = jnp.max(logits, axis=1, keepdims=True)
    e = jnp.exp(logits - m)
    s = jnp.sum(e, axis=1, keepdims=True)
    o_ref[...] = (e / s).astype(o_ref.dtype)   # exact normalization; DMA-bound anyway


def _cdiv(a, b):
    return (a + b - 1) // b


def _round_up(n, m):
    return _cdiv(n, m) * m


def prepare_params(w1, b1, w2, b2):
    """One-time weight preprocessing (hoisted out of the per-call forward path).

    w1: (784, 128), b1: (128,), w2: (128, 10), b2: (10,)  -- (in, out) layout.
    """
    w1_bf16 = w1.astype(jnp.bfloat16)
    b1_2d = b1.reshape(1, HIDDEN).astype(jnp.float32)
    w2_p = jnp.zeros((HIDDEN, OUT_PADDED), jnp.bfloat16)
    w2_p = w2_p.at[:, :OUT_FEATURES].set(w2.astype(jnp.bfloat16))
    b2_p = jnp.full((1, OUT_PADDED), NEG_BIG, jnp.float32)
    b2_p = b2_p.at[:, :OUT_FEATURES].set(
        b2.reshape(1, OUT_FEATURES).astype(jnp.float32))
    return w1_bf16, b1_2d, w2_p, b2_p


def simple_nn_forward(x_nchw, w1_bf16, b1_2d, w2_p, b2_p):
    """x_nchw: (B, 1, 28, 28) float32 -> probabilities (B, 10) float32."""
    batch = x_nchw.shape[0]
    x = x_nchw.reshape(-1, IN_FEATURES)          # same as torch .view(-1, 784); stays f32

    # ---- batch tiling: equalized tiles, >= 2 tiles when possible (v7x 2 TCs) ----
    b_min = _round_up(max(batch, 8), TILE_ALIGN)
    num_tiles = max(_cdiv(b_min, TB_MAX), 2 if b_min >= 2 * TILE_ALIGN else 1)
    tb = _round_up(_cdiv(b_min, num_tiles), TILE_ALIGN)
    b_pad = tb * num_tiles
    if b_pad != batch:
        x = jnp.pad(x, ((0, b_pad - batch), (0, 0)))   # <16 wasted rows per tile

    cost = pl.CostEstimate(
        flops=2 * b_pad * (IN_FEATURES * HIDDEN + HIDDEN * OUT_PADDED),
        transcendentals=b_pad * OUT_PADDED,
        bytes_accessed=(x.size * 4                      # f32 x read
                        + w1_bf16.size * 2 + w2_p.size * 2
                        + (b1_2d.size + b2_p.size) * 4
                        + b_pad * OUT_PADDED * 2),      # bf16 writeback
    )

    out = pl.pallas_call(
        simple_nn_kernel,
        out_shape=jax.ShapeDtypeStruct((b_pad, OUT_PADDED), jnp.bfloat16),
        grid_spec=pltpu.PrefetchScalarGridSpec(
            num_scalar_prefetch=0,
            grid=(num_tiles,),
            in_specs=[
                pl.BlockSpec((tb, IN_FEATURES), lambda i: (i, 0)),        # x tile (f32)
                pl.BlockSpec((IN_FEATURES, HIDDEN), lambda i: (0, 0)),    # w1 resident
                pl.BlockSpec((1, HIDDEN), lambda i: (0, 0)),              # b1 resident
                pl.BlockSpec((HIDDEN, OUT_PADDED), lambda i: (0, 0)),     # w2 resident
                pl.BlockSpec((1, OUT_PADDED), lambda i: (0, 0)),          # b2 resident
            ],
            out_specs=pl.BlockSpec((tb, OUT_PADDED), lambda i: (i, 0)),
        ),
        compiler_params=pltpu.CompilerParams(
            dimension_semantics=("parallel",),       # megacore-shardable on v7x
            vmem_limit_bytes=48 << 20,               # headroom; < v7x 64 MiB
        ),
        cost_estimate=cost,
    )(x, w1_bf16, b1_2d, w2_p, b2_p)

    return out[:batch, :OUT_FEATURES].astype(jnp.float32)


def init_params(key):
    """Deterministic init mimicking nn.Linear's uniform(-1/sqrt(fan_in), ...)."""
    k1, k2, k3, k4 = jax.random.split(key, 4)
    bound1 = 1.0 / jnp.sqrt(jnp.float32(IN_FEATURES))
    bound2 = 1.0 / jnp.sqrt(jnp.float32(HIDDEN))
    # Stored as (in, out): transpose of PyTorch's (out, in) weight layout.
    w1 = jax.random.uniform(k1, (IN_FEATURES, HIDDEN), jnp.float32,
                            minval=-bound1, maxval=bound1)
    b1 = jax.random.uniform(k2, (HIDDEN,), jnp.float32,
                            minval=-bound1, maxval=bound1)
    w2 = jax.random.uniform(k3, (HIDDEN, OUT_FEATURES), jnp.float32,
                            minval=-bound2, maxval=bound2)
    b2 = jax.random.uniform(k4, (OUT_FEATURES,), jnp.float32,
                            minval=-bound2, maxval=bound2)
    return w1, b1, w2, b2


if __name__ == "__main__":
    key = jax.random.PRNGKey(0)
    k_params, k_x = jax.random.split(key)
    w1, b1, w2, b2 = init_params(k_params)

    # One-time weight preprocessing (hoisted out of the forward path).
    w1_bf16, b1_2d, w2_p, b2_p = prepare_params(w1, b1, w2, b2)

    batch = 2
    x = jax.random.normal(k_x, (batch, 1, 28, 28), jnp.float32)

    forward = jax.jit(simple_nn_forward)
    out = forward(x, w1_bf16, b1_2d, w2_p, b2_p)
    out = jax.block_until_ready(out)

    # sanity check against pure-JAX f32 reference (tolerances relaxed because
    # the kernel intentionally runs the matmuls with bf16 operands and stores
    # the probabilities as bf16)
    x_flat = x.reshape(-1, IN_FEATURES)
    h_ref = jnp.maximum(x_flat @ w1 + b1, 0.0)
    logits_ref = h_ref @ w2 + b2
    ref = jax.nn.softmax(logits_ref, axis=1)
    assert out.shape == (batch, OUT_FEATURES)
    assert jnp.allclose(out, ref, atol=1e-2, rtol=1e-2)
    assert jnp.allclose(jnp.sum(out, axis=1), 1.0, atol=1e-2)

    print("KERNEL_OK")
</pallas_src>

<mosaic_0001>
module attributes {stable_mosaic.version = 11 : i64} {
  func.func @simple_nn_kernel(%arg0: i32, %arg1: memref<16x784xf32, #tpu.memory_space<vmem>>, %arg2: memref<784x128xbf16, #tpu.memory_space<vmem>>, %arg3: memref<1x128xf32, #tpu.memory_space<vmem>>, %arg4: memref<128x128xbf16, #tpu.memory_space<vmem>>, %arg5: memref<1x128xf32, #tpu.memory_space<vmem>>, %arg6: memref<16x128xbf16, #tpu.memory_space<vmem>>) attributes {dimension_semantics = [#tpu.dimension_semantics<parallel>], iteration_bounds = array<i64: 1>, scalar_prefetch = 0 : i64, scratch_operands = 0 : i64, tpu.core_type = #tpu.core_type<tc>, window_params = [{transform_indices = @transform_0, window_bounds = array<i64: 16, 784>}, {pipeline_mode = #tpu.pipeline_mode<synchronous>, transform_indices = @transform_1, window_bounds = array<i64: 784, 128>}, {pipeline_mode = #tpu.pipeline_mode<synchronous>, transform_indices = @transform_2, window_bounds = array<i64: 1, 128>}, {pipeline_mode = #tpu.pipeline_mode<synchronous>, transform_indices = @transform_3, window_bounds = array<i64: 128, 128>}, {pipeline_mode = #tpu.pipeline_mode<synchronous>, transform_indices = @transform_4, window_bounds = array<i64: 1, 128>}, {transform_indices = @transform_5, window_bounds = array<i64: 16, 128>}]} {
    %c0 = arith.constant 0 : index
    %c0_0 = arith.constant 0 : index
    %0 = vector.load %arg1[%c0, %c0_0] : memref<16x784xf32, #tpu.memory_space<vmem>>, vector<16x784xf32>
    %1 = arith.truncf %0 : vector<16x784xf32> to vector<16x784xbf16>
    %c0_1 = arith.constant 0 : index
    %c0_2 = arith.constant 0 : index
    %2 = vector.load %arg2[%c0_1, %c0_2] : memref<784x128xbf16, #tpu.memory_space<vmem>>, vector<784x128xbf16>
    %cst = arith.constant dense<0.000000e+00> : vector<16x128xf32>
    %3 = tpu.matmul %1, %2, %cst {dimension_numbers = #tpu.dot_dimension_numbers<[1], [0], [0], [1], [0, 0, 1, 1], [], []>} : vector<16x784xbf16>, vector<784x128xbf16>, vector<16x128xf32> -> vector<16x128xf32>
    %c0_3 = arith.constant 0 : index
    %c0_4 = arith.constant 0 : index
    %4 = vector.load %arg3[%c0_3, %c0_4] : memref<1x128xf32, #tpu.memory_space<vmem>>, vector<1x128xf32>
    %5 = vector.broadcast %4 : vector<1x128xf32> to vector<16x128xf32>
    %6 = arith.addf %3, %5 : vector<16x128xf32>
    %cst_5 = arith.constant 0.000000e+00 : f32
    %7 = vector.broadcast %cst_5 : f32 to vector<16x128xf32>
    %8 = arith.maximumf %6, %7 : vector<16x128xf32>
    %9 = arith.truncf %8 : vector<16x128xf32> to vector<16x128xbf16>
    %c0_6 = arith.constant 0 : index
    %c0_7 = arith.constant 0 : index
    %10 = vector.load %arg4[%c0_6, %c0_7] : memref<128x128xbf16, #tpu.memory_space<vmem>>, vector<128x128xbf16>
    %cst_8 = arith.constant dense<0.000000e+00> : vector<16x128xf32>
    %11 = tpu.matmul %9, %10, %cst_8 {dimension_numbers = #tpu.dot_dimension_numbers<[1], [0], [0], [1], [0, 0, 1, 1], [], []>} : vector<16x128xbf16>, vector<128x128xbf16>, vector<16x128xf32> -> vector<16x128xf32>
    %c0_9 = arith.constant 0 : index
    %c0_10 = arith.constant 0 : index
    %12 = vector.load %arg5[%c0_9, %c0_10] : memref<1x128xf32, #tpu.memory_space<vmem>>, vector<1x128xf32>
    %13 = vector.broadcast %12 : vector<1x128xf32> to vector<16x128xf32>
    %14 = arith.addf %11, %13 : vector<16x128xf32>
    %cst_11 = arith.constant dense<0xFF800000> : vector<16xf32>
    %15 = vector.multi_reduction <maximumf>, %14, %cst_11 [1] : vector<16x128xf32> to vector<16xf32>
    %16 = vector.shape_cast %15 : vector<16xf32> to vector<16x1xf32>
    %17 = vector.broadcast %16 : vector<16x1xf32> to vector<16x128xf32>
    %18 = arith.subf %14, %17 : vector<16x128xf32>
    %19 = math.exp %18 : vector<16x128xf32>
    %cst_12 = arith.constant dense<0.000000e+00> : vector<16xf32>
    %20 = vector.multi_reduction <add>, %19, %cst_12 [1] : vector<16x128xf32> to vector<16xf32>
    %21 = vector.shape_cast %20 : vector<16xf32> to vector<16x1xf32>
    %22 = vector.broadcast %21 : vector<16x1xf32> to vector<16x128xf32>
    %23 = arith.divf %19, %22 : vector<16x128xf32>
    %24 = arith.truncf %23 : vector<16x128xf32> to vector<16x128xbf16>
    %c0_13 = arith.constant 0 : index
    %c0_14 = arith.constant 0 : index
    %25 = vector.load %arg6[%c0_13, %c0_14] : memref<16x128xbf16, #tpu.memory_space<vmem>>, vector<16x128xbf16>
    tpu.vector_store %arg6[%c0_13, %c0_14], %24 {strides = array<i32>} : memref<16x128xbf16, #tpu.memory_space<vmem>>, vector<16x128xbf16>,
    return
  }
  func.func @transform_0(%arg0: i32) -> (i32, i32) {
    %c0_i32 = arith.constant 0 : i32
    %c0_i32_0 = arith.constant 0 : i32
    return %arg0, %c0_i32 : i32, i32
  }
  func.func @transform_1(%arg0: i32) -> (i32, i32) {
    %c0_i32 = arith.constant 0 : i32
    %c0_i32_0 = arith.constant 0 : i32
    %c0_i32_1 = arith.constant 0 : i32
    return %c0_i32, %c0_i32_0 : i32, i32
  }
  func.func @transform_2(%arg0: i32) -> (i32, i32) {
    %c0_i32 = arith.constant 0 : i32
    %c0_i32_0 = arith.constant 0 : i32
    %c0_i32_1 = arith.constant 0 : i32
    return %c0_i32, %c0_i32_0 : i32, i32
  }
  func.func @transform_3(%arg0: i32) -> (i32, i32) {
    %c0_i32 = arith.constant 0 : i32
    %c0_i32_0 = arith.constant 0 : i32
    %c0_i32_1 = arith.constant 0 : i32
    return %c0_i32, %c0_i32_0 : i32, i32
  }
  func.func @transform_4(%arg0: i32) -> (i32, i32) {
    %c0_i32 = arith.constant 0 : i32
    %c0_i32_0 = arith.constant 0 : i32
    %c0_i32_1 = arith.constant 0 : i32
    return %c0_i32, %c0_i32_0 : i32, i32
  }
  func.func @transform_5(%arg0: i32) -> (i32, i32) {
    %c0_i32 = arith.constant 0 : i32
    %c0_i32_0 = arith.constant 0 : i32
    return %arg0, %c0_i32 : i32, i32
  }
}

</mosaic_0001>

<bundles_post_ra>
// kernel: simple_nn_forward.1
= control target key start
LH: loop header
LB: loop body
LE: loop exit
PB: predicated region body
PF: predicated region fallthrough
CT: control target
= control target key end

     0   :  { %10 = vsyncpa [#allocation3], 0  ;;  %s1037_s18 = smov [#allocation2]   ;;  %s1172_s0 = inlined_call_operand.vmem [shape: f32[16,784], index: 0, kind: input, shape index: {}]   ;;  %s1173_s1 = inlined_call_operand.hbm [shape: bf16[784,128], index: 1, kind: input, shape index: {}]   ;;  %s1174_s2 = inlined_call_operand.vmem [shape: f32[1,128], index: 2, kind: input, shape index: {}]   ;;  %s1175_s3 = inlined_call_operand.vmem [shape: bf16[128,128], index: 3, kind: input, shape index: {}]   ;;  %s1176_s4 = inlined_call_operand.vmem [shape: f32[1,128], index: 4, kind: input, shape index: {}]   ;;  %s1177_s5 = inlined_call_operand.vmem [shape: bf16[16,128], index: 5, kind: output, shape index: {}]  }
   0x1   :  { %s18_s19 = sshll.u32 %s1037_s18, 4  ;;  %s1013_s22 = scalar_lea.hbm %s1173_s1, 6272  ;;  %s19_s19 = int_to_ptr.vmem [resolvable:$true] %s18_s19 }
   0x2   :  { %p1014_p0 = scmp.ne.s32.totalorder %s1173_s1, %s1013_s22  ;;  %p1017_p1 = scmp.lt.u32.totalorder %s1013_s22, %s1173_s1 }
   0x4   :  { %p1019_p2 = pnand %p1017_p1, %p1014_p0 }
   0x6   :  { %1022 = shalt.err (!%p1019_p2)
}
   0x7   :  { %s1023_s27 = scalar_lea.vmem %s19_s19, 6272  ;;  %p1028_p4 = scmp.lt.s32.totalorder %s19_s19, %s19_s19 }
   0x8   :  { %p1024_p3 = scmp.ne.s32.totalorder %s19_s19, %s1023_s27  ;;  %p1029_p5 = scmp.lt.s32.totalorder %s1023_s27, %s1023_s27 }
   0xa   :  { %p1030_p6 = por %p1029_p5, %p1028_p4 }
   0xc   :  { %p1031_p7 = pnand %p1030_p6, %p1024_p3 }
   0xe   :  { %1034 = shalt.err (!%p1031_p7)
}
   0xf   :  { %s1038_s28 = smov 64   ;;  %s1039_s29 = smov 4  }
  0x10   :  { %24 = dma.hbm_to_vmem [thread:$0]  %s1173_s1, 6272, %s19_s19, [#allocation3], %s1038_s28, %s1038_s28, %s1039_s29  }
  0x11   :  { %1035 = dma.done.wait [#allocation3], 6272  }
  0x12   :  { %1036 = vsyncadd [#allocation3], 4294961024  ;;  %v948_v0 = vld [vmem:[#allocation2 + $0x40] sm:$0xff]   ;;  %v952_v4 = vld [vmem:[#allocation2 + $0x48] sm:$0xff]   ;;  %v1040_v43 = vmov 0.0   ;;  %vm1041_vm0 = vmmov 0  }
  0x13   :  { %v949_v1 = vld [vmem:[#allocation2] sm:$0xff]   ;;  %840 = vmatprep.subr.bf16.mxu0 %v948_v0  ;;  %v953_v5 = vld [vmem:[#allocation2 + $0x8] sm:$0xff]   ;;  %v956_v8 = vld [vmem:[#allocation2 + $0x50] sm:$0xff]   ;;  %vm455_vm1 = vcmask 130048  }
  0x14   :  { %v950_v2 = vld [vmem:[#allocation2 + $0xc0] sm:$0xff]   ;;  %841 = vmatpush3.bf16.msra.mxu0 %v949_v1  ;;  %v954_v6 = vld [vmem:[#allocation2 + $0xc8] sm:$0xff]   ;;  %v957_v9 = vld [vmem:[#allocation2 + $0x10] sm:$0xff]  }
  0x15   :  { %v951_v3 = vld [vmem:[#allocation2 + $0x80] sm:$0xff]   ;;  %862 = vmatprep.subr.bf16.mxu1 %v950_v2  ;;  %842 = vmatprep.subr.bf16.mxu0 %v952_v4  ;;  %v955_v7 = vld [vmem:[#allocation2 + $0x88] sm:$0xff]   ;;  %v958_v10 = vld [vmem:[#allocation2 + $0xd0] sm:$0xff]  }
  0x16   :  { %863 = vmatpush3.bf16.msra.mxu1 %v951_v3  ;;  %v959_v11 = vld [vmem:[#allocation2 + $0x90] sm:$0xff]   ;;  %v960_v12 = vld [vmem:[#allocation2 + $0x58] sm:$0xff]   ;;  %v964_v16 = vld [vmem:[#allocation2 + $0x60] sm:$0xff]  }
  0x17   :  { %864 = vmatprep.subr.bf16.mxu1 %v954_v6  ;;  %v961_v13 = vld [vmem:[#allocation2 + $0x18] sm:$0xff]   ;;  %v965_v17 = vld [vmem:[#allocation2 + $0x20] sm:$0xff]   ;;  %v968_v20 = vld [vmem:[#allocation2 + $0x68] sm:$0xff]  }
  0x18   :  { %843 = vmatpush3.bf16.msra.mxu0 %v953_v5  ;;  %v962_v14 = vld [vmem:[#allocation2 + $0xd8] sm:$0xff]   ;;  %v966_v18 = vld [vmem:[#allocation2 + $0xe0] sm:$0xff]   ;;  %v969_v21 = vld [vmem:[#allocation2 + $0x28] sm:$0xff]  }
  0x19   :  { %844 = vmatprep.subr.bf16.mxu0 %v956_v8  ;;  %v963_v15 = vld [vmem:[#allocation2 + $0x98] sm:$0xff]   ;;  %v967_v19 = vld [vmem:[#allocation2 + $0xa0] sm:$0xff]   ;;  %v970_v22 = vld [vmem:[#allocation2 + $0xe8] sm:$0xff]  }
  0x1a   :  { %865 = vmatpush3.bf16.msra.mxu1 %v955_v7  ;;  %v971_v23 = vld [vmem:[#allocation2 + $0xa8] sm:$0xff]   ;;  %v972_v24 = vld [vmem:[#allocation2 + $0x70] sm:$0xff]   ;;  %v976_v28 = vld [vmem:[#allocation2 + $0x78] sm:$0xff]  }
  0x1b   :  { %866 = vmatprep.subr.bf16.mxu1 %v958_v10  ;;  %v973_v25 = vld [vmem:[#allocation2 + $0x30] sm:$0xff]   ;;  %v977_v29 = vld [vmem:[#allocation2 + $0x38] sm:$0xff]   ;;  %v36_v31 = vld [vmem:[%s1172_s0 + $0x8] sm:$0xff] }
  0x1c   :  { %845 = vmatpush3.bf16.msra.mxu0 %v957_v9  ;;  %v974_v26 = vld [vmem:[#allocation2 + $0xf0] sm:$0xff]   ;;  %v978_v30 = vld [vmem:[#allocation2 + $0xf8] sm:$0xff]   ;;  %v43_v32 = vld [vmem:[%s1172_s0 + $0x40] sm:$0xff] }
  0x1d   :  { %846 = vmatprep.subr.bf16.mxu0 %v960_v12  ;;  %v975_v27 = vld [vmem:[#allocation2 + $0xb0] sm:$0xff]   ;;  %v50_v33 = vpack.c.bf16 %v43_v32, %v36_v31  ;;  %v979_v34 = vld [vmem:[#allocation2 + $0xb8] sm:$0xff]   ;;  %v35_v35 = vld [vmem:[%s1172_s0] sm:$0xff] }
  0x1e   :  { %867 = vmatpush3.bf16.msra.mxu1 %v959_v11  ;;  %v42_v36 = vld [vmem:[%s1172_s0 + $0x38] sm:$0xff]  ;;  %v980_v38 = vld [vmem:[#allocation2 + $0x140] sm:$0xff]   ;;  %v45_v40 = vld [vmem:[%s1172_s0 + $0x50] sm:$0xff] }
  0x1f   :  { %868 = vmatprep.subr.bf16.mxu1 %v962_v14  ;;  %491 = vmatprep.mubr.bf16.mxu0 %v50_v33  ;;  %v49_v37 = vpack.c.bf16 %v42_v36, %v35_v35  ;;  %v38_v39 = vld [vmem:[%s1172_s0 + $0x18] sm:$0xff]  ;;  %v981_v42 = vld [vmem:[#allocation2 + $0x100] sm:$0xff]   ;;  %v37_v44 = vld [vmem:[%s1172_s0 + $0x10] sm:$0xff] }
  0x20   :  { %847 = vmatpush3.bf16.msra.mxu0 %v961_v13  ;;  %v52_v41 = vpack.c.bf16 %v45_v40, %v38_v39  ;;  %v44_v45 = vld [vmem:[%s1172_s0 + $0x48] sm:$0xff]  ;;  %v984_v49 = vld [vmem:[#allocation2 + $0x150] sm:$0xff]   ;;  %v986_v51 = vld [vmem:[#allocation2 + $0x158] sm:$0xff]  }
  0x21   :  { %848 = vmatprep.subr.bf16.mxu0 %v964_v16  ;;  %v51_v46 = vpack.c.bf16 %v44_v45, %v37_v44  ;;  %v982_v47 = vld [vmem:[#allocation2 + $0x148] sm:$0xff]   ;;  %v985_v50 = vld [vmem:[#allocation2 + $0x110] sm:$0xff]   ;;  %v987_v52 = vld [vmem:[#allocation2 + $0x118] sm:$0xff]  }
  0x22   :  { %869 = vmatpush3.bf16.msra.mxu1 %v963_v15  ;;  %532 = vmatprep.mubr.bf16.mxu1 %v52_v41  ;;  %v983_v48 = vld [vmem:[#allocation2 + $0x108] sm:$0xff]   ;;  %v988_v53 = vld [vmem:[#allocation2 + $0x160] sm:$0xff]   ;;  %v992_v59 = vld [vmem:[#allocation2 + $0x170] sm:$0xff]  }
  0x23   :  { %870 = vmatprep.subr.bf16.mxu1 %v966_v18  ;;  %v989_v54 = vld [vmem:[#allocation2 + $0x120] sm:$0xff]   ;;  %v990_v55 = vld [vmem:[#allocation2 + $0x168] sm:$0xff]   ;;  %v41_v62 = vld [vmem:[%s1172_s0 + $0x30] sm:$0xff] }
  0x24   :  { %849 = vmatpush3.bf16.msra.mxu0 %v965_v17  ;;  %v996_v56 = vld [vmem:[#allocation2 + $0x180] sm:$0xff]   ;;  %v40_v57 = vld [vmem:[%s1172_s0 + $0x28] sm:$0xff]  ;;  %v993_v1 = vld [vmem:[#allocation2 + $0x130] sm:$0xff]  }
  0x25   :  { %850 = vmatprep.subr.bf16.mxu0 %v968_v20  ;;  %v991_v58 = vld [vmem:[#allocation2 + $0x128] sm:$0xff]   ;;  %v47_v60 = vld [vmem:[%s1172_s0 + $0x60] sm:$0xff]  ;;  %v994_v2 = vld [vmem:[#allocation2 + $0x178] sm:$0xff]  }
  0x26   :  { %871 = vmatpush3.bf16.msra.mxu1 %v967_v19  ;;  %v54_v61 = vpack.c.bf16 %v47_v60, %v40_v57  ;;  %v48_v63 = vld [vmem:[%s1172_s0 + $0x68] sm:$0xff]  ;;  %v995_v3 = vld [vmem:[#allocation2 + $0x138] sm:$0xff]   ;;  %v39_v4 = vld [vmem:[%s1172_s0 + $0x20] sm:$0xff] }
  0x27   :  { %872 = vmatprep.subr.bf16.mxu1 %v970_v22  ;;  %v55_v0 = vpack.c.bf16 %v48_v63, %v41_v62  ;;  %v46_v5 = vld [vmem:[%s1172_s0 + $0x58] sm:$0xff]  ;;  %v997_v7 = vld [vmem:[%s1175_s3] sm:$0xff]   ;;  %v998_v8 = vld [vmem:[%s1175_s3 + $0x8] sm:$0xff]  }
  0x28   :  { %851 = vmatpush3.bf16.msra.mxu0 %v969_v21  ;;  %v53_v6 = vpack.c.bf16 %v46_v5, %v39_v4  ;;  %v999_v9 = vld [vmem:[%s1175_s3 + $0x10] sm:$0xff]   ;;  %v1000_v10 = vld [vmem:[%s1175_s3 + $0x18] sm:$0xff]   ;;  %v1001_v11 = vld [vmem:[%s1175_s3 + $0x20] sm:$0xff]  }
  0x29   :  { %852 = vmatprep.subr.bf16.mxu0 %v972_v24  ;;  %v1002_v12 = vld [vmem:[%s1175_s3 + $0x28] sm:$0xff]   ;;  %v1003_v13 = vld [vmem:[%s1175_s3 + $0x30] sm:$0xff]   ;;  %v1004_v14 = vld [vmem:[%s1175_s3 + $0x38] sm:$0xff]  }
  0x2a   :  { %873 = vmatpush3.bf16.msra.mxu1 %v971_v23  ;;  %v771_v16 = vld [vmem:[%s1174_s2] ss:$0 sm:$0xff] }
  0x2b   :  { %874 = vmatprep.subr.bf16.mxu1 %v974_v26 }
  0x2c   :  { %853 = vmatpush3.bf16.msra.mxu0 %v973_v25 }
  0x2d   :  { %854 = vmatprep.subr.bf16.mxu0 %v976_v28 }
  0x2e   :  { %875 = vmatpush3.bf16.msra.mxu1 %v975_v27 }
  0x2f   :  { %876 = vmatprep.subr.bf16.mxu1 %v978_v30 }
  0x30   :  { %855 = vmatpush3.bf16.msra.mxu0 %v977_v29 }
  0x31   :  { %884 = vmatprep.subr.bf16.mxu0 %v980_v38 }
  0x32   :  { %877 = vmatpush3.bf16.msra.mxu1 %v979_v34 }
  0x33   :  { %917 = vmatprep.subr.bf16.mxu1 %v1040_v43  ;;  %492 = vmatmul.mubr.bf16.vlgmr.msra.gmra.mrb[0].mxu0 %v49_v37 }
  0x34   :  { %885 = vmatpush3.bf16.msra.mxu0 %v981_v42  ;;  %573 = vmatprep.mubr.bf16.mxu0 %v54_v61 }
  0x35   :  { %533 = vmatmul.mubr.bf16.vlgmr.msra.gmra.mrb[0].mxu1 %v51_v46  ;;  %886 = vmatprep.subr.bf16.mxu0 %v982_v47 }
  0x36   :  { %919 = vmatprep.mubr.msk.bf16.mxu1 %vm1041_vm0, %v1040_v43  ;;  %918 = vmatpush3.bf16.msra.mxu1 %v996_v56 }
  0x37   :  { %923 = vmatprep.subr.bf16.mxu1 %v1040_v43 }
  0x38   :  { %887 = vmatpush3.bf16.msra.mxu0 %v983_v48 }
  0x39   :  { %888 = vmatprep.subr.bf16.mxu0 %v984_v49  ;;  %v822_v49 = vld [vmem:[%s1176_s4] ss:$0 sm:$0xff] }
  0x3c   :  { %889 = vmatpush3.bf16.msra.mxu0 %v985_v50 }
  0x3d   :  { %890 = vmatprep.subr.bf16.mxu0 %v986_v51  ;;  %920 = vmatmul.mubr.msk.bf16.vlgmr.msra.gmra.mrb[4].mxu1 %vm455_vm1, %v55_v0 }
  0x3e   :  { %939 = vmatprep.mubr.msk.bf16.mxu1 %vm1041_vm0, %v1040_v43  ;;  %924 = vmatpush3.bf16.msra.mxu1 %v997_v7 }
  0x3f   :  { %925 = vmatprep.subr.bf16.mxu1 %v1040_v43 }
  0x40   :  { %891 = vmatpush3.bf16.msra.mxu0 %v987_v52 }
  0x41   :  { %892 = vmatprep.subr.bf16.mxu0 %v988_v53 }
  0x42   :  { %926 = vmatpush3.bf16.msra.mxu1 %v998_v8 }
  0x43   :  { %927 = vmatprep.subr.bf16.mxu1 %v1040_v43 }
  0x44   :  { %893 = vmatpush3.bf16.msra.mxu0 %v989_v54 }
  0x45   :  { %894 = vmatprep.subr.bf16.mxu0 %v990_v55 }
  0x46   :  { %928 = vmatpush3.bf16.msra.mxu1 %v999_v9 }
  0x47   :  { %929 = vmatprep.subr.bf16.mxu1 %v1040_v43 }
  0x48   :  { %895 = vmatpush3.bf16.msra.mxu0 %v991_v58 }
  0x49   :  { %896 = vmatprep.subr.bf16.mxu0 %v992_v59 }
  0x4a   :  { %930 = vmatpush3.bf16.msra.mxu1 %v1000_v10 }
  0x4b   :  { %931 = vmatprep.subr.bf16.mxu1 %v1040_v43 }
  0x4c   :  { %897 = vmatpush3.bf16.msra.mxu0 %v993_v1 }
  0x4d   :  { %898 = vmatprep.subr.bf16.mxu0 %v994_v2 }
  0x4e   :  { %932 = vmatpush3.bf16.msra.mxu1 %v1001_v11 }
  0x4f   :  { %933 = vmatprep.subr.bf16.mxu1 %v1040_v43 }
  0x50   :  { %899 = vmatpush3.bf16.msra.mxu0 %v995_v3 }
  0x52   :  { %934 = vmatpush3.bf16.msra.mxu1 %v1002_v12 }
  0x53   :  { %574 = vmatmul.mubr.bf16.vlgmr.msra.gmra.mrb[4].mxu0 %v53_v6  ;;  %935 = vmatprep.subr.bf16.mxu1 %v1040_v43 }
  0x56   :  { %936 = vmatpush3.bf16.msra.mxu1 %v1003_v13 }
  0x57   :  { %937 = vmatprep.subr.bf16.mxu1 %v1040_v43 }
  0x5a   :  { %938 = vmatpush3.bf16.msra.mxu1 %v1004_v14 }
 0x106   :  { %v856_v15 = vpop.f32.mrb[0].mxu0 }
 0x107   :  { %v857_v17 = vpop.f32.mrb[1].mxu0 }
 0x108   :  { %v858_v18 = vadd.f32 %v857_v17, %v856_v15  ;;  %v859_v19 = vpop.f32.mrb[2].mxu0  ;;  %v878_v20 = vpop.f32.mrb[0].mxu1 }
 0x109   :  { %v860_v21 = vpop.f32.mrb[3].mxu0  ;;  %v879_v24 = vpop.f32.mrb[1].mxu1 }
 0x10a   :  { %v494_v22 = vadd.f32 %v858_v18, %v771_v16  ;;  %v861_v23 = vadd.f32 %v860_v21, %v859_v19  ;;  %v880_v25 = vadd.f32 %v879_v24, %v878_v20  ;;  %v881_v26 = vpop.f32.mrb[2].mxu1 }
 0x10b   :  { %v882_v28 = vpop.f32.mrb[3].mxu1 }
 0x10c   :  { %v497_v27 = vadd.f32 %v861_v23, %v771_v16  ;;  %v535_v29 = vadd.f32 %v880_v25, %v494_v22  ;;  %v883_v30 = vadd.f32 %v882_v28, %v881_v26 }
 0x10e   :  { %v538_v31 = vadd.f32 %v883_v30, %v497_v27 }
 0x110   :  { %v616_v32 = vpop.f32.mrb[4].mxu1 }
 0x111   :  { %v921_v33 = vpop.f32.mrb[5].mxu1 }
 0x112   :  { %v619_v34 = vpop.f32.mrb[6].mxu1 }
 0x113   :  { %v922_v35 = vpop.f32.mrb[7].mxu1 }
 0x126   :  { %v900_v36 = vpop.f32.mrb[4].mxu0 }
 0x127   :  { %v901_v37 = vpop.f32.mrb[5].mxu0 }
 0x128   :  { %v902_v38 = vadd.f32 %v901_v37, %v900_v36  ;;  %v903_v39 = vpop.f32.mrb[6].mxu0 }
 0x129   :  { %v904_v40 = vpop.f32.mrb[7].mxu0 }
 0x12a   :  { %v576_v41 = vadd.f32 %v902_v38, %v535_v29  ;;  %v905_v42 = vadd.f32 %v904_v40, %v903_v39 }
 0x12c   :  { %v617_v43 = vadd.f32 %v616_v32, %v576_v41  ;;  %v579_v44 = vadd.f32 %v905_v42, %v538_v31 }
 0x12e   :  { %v620_v45 = vadd.f32 %v619_v34, %v579_v44  ;;  %v623_v46 = vmax.f32 %v617_v43, 0.0 }
 0x130   :  { %v624_v47 = vmax.f32 %v620_v45, 0.0 }
 0x132   :  { %v625_v48 = vpack.c.bf16 %v624_v47, %v623_v46 }
 0x134   :  { %940 = vmatmul.mubr.bf16.vlgmr.msra.gmra.mrb[8].mxu1 %v625_v48 }
 0x207   :  { %v731_v50 = vpop.f32.mrb[8].mxu1 }
 0x208   :  { %v732_v51 = vadd.f32 %v822_v49, %v731_v50  ;;  %v941_v52 = vpop.f32.mrb[9].mxu1 }
 0x209   :  { %v734_v53 = vpop.f32.mrb[10].mxu1 }
 0x20a   :  { %738 = vmax.xlane.f32.xlu0 %v732_v51  ;;  %v942_v54 = vpop.f32.mrb[11].mxu1  ;;  %v735_v55 = vadd.f32 %v822_v49, %v734_v53 }
 0x20e   :  { %740 = vmax.xlane.f32.xlu0 %v735_v55 }
 0x297   :  { %v739_v56 = vpop.xlane.xlu0 %738 }
 0x298   :  { %v742_v57 = vsub.f32 %v732_v51, %v739_v56 }
 0x29a   :  { %v744_v58 = vmul.f32 1.442695, %v742_v57 }
 0x29b   :  { %v741_v59 = vpop.xlane.xlu0 %740 }
 0x29c   :  { %1005 = vpow2.f32 %v744_v58  ;;  %v743_v60 = vsub.f32 %v735_v55, %v741_v59 }
 0x29e   :  { %v746_v61 = vmul.f32 1.442695, %v743_v60 }
 0x2a0   :  { %1007 = vpow2.f32 %v746_v61 }
 0x2a6   :  { %v1006_v62 = vpop.eup %1005 }
 0x2a7   :  { %748 = vadd.xlane.f32.xlu1 %v1006_v62 }
 0x2aa   :  { %v1008_v63 = vpop.eup %1007 }
 0x2ab   :  { %750 = vadd.xlane.f32.xlu1 %v1008_v63 }
 0x334   :  { %v749_v0 = vpop.xlane.xlu1 %748 }
 0x335   :  { %1009 = vrcp.f32 %v749_v0 }
 0x338   :  { %v751_v1 = vpop.xlane.xlu1 %750 }
 0x339   :  { %1011 = vrcp.f32 %v751_v1 }
 0x33f   :  { %v1010_v2 = vpop.eup %1009 }
 0x340   :  { %v753_v4 = vmul.f32 %v1010_v2, %v1006_v62 }
 0x343   :  { %v1012_v3 = vpop.eup %1011 }
 0x344   :  { %v755_v5 = vmul.f32 %v1012_v3, %v1008_v63 }
 0x346   :  { %v838_v6 = vpack.c.bf16 %v755_v5, %v753_v4 }
 0x348   :  { %839 = vst [vmem:[%s1177_s5] sm:$0xff] %v838_v6  }
 0x349   :  { %770 = vsyncpa [#allocation3], 1 }

</bundles_post_ra>
